<compile_context>
chip_gen: v5e
topology: v5e:2x2
jax: 0.10.0
libtpu: 0.0.40
codegen_flags: <defaults>
</compile_context>

<pallas_src>
import jax
import jax.numpy as jnp
import numpy as np
from jax.experimental import pallas as pl
from jax.experimental.pallas import tpu as pltpu


def _gap_kernel(x_ref, w1t_ref, b1_ref, w2t_ref, out_ref):
    """One block of TB batch elements per grid step.

    x_ref  : [TB, C, P]  activations (channels on sublanes, spatial on lanes)
    w1t_ref: [A, C]      first 1x1 conv weight, transposed
    b1_ref : [A, 1]      its bias (broadcasts over lanes)
    w2t_ref: [1, A]      second 1x1 conv weight, transposed (b2 dropped: no-op)
    out_ref: [TB, C]     per-step output block
    """
    w1t = w1t_ref[...]
    b1 = b1_ref[...]
    w2t = w2t_ref[...]
    tb_block = x_ref.shape[0]

    for tb in range(tb_block):  # static unroll: clean 2-D MXU ops per element
        x = x_ref[tb]                                                  # [C, P]

        # attention_network: 1x1 conv (C->A) + tanh + 1x1 conv (A->1), transposed
        h = jnp.tanh(
            jnp.dot(w1t, x, preferred_element_type=jnp.float32) + b1   # [A, P]
        )
        s = jnp.dot(w2t, h, preferred_element_type=jnp.float32)        # [1, P]

        # softmax statistics over the lane (P) axis
        m = jnp.max(s, axis=-1, keepdims=True)                         # [1, 1]
        e = jnp.exp(s - m)                                             # [1, P]
        denom = jnp.sum(e, axis=-1, keepdims=True)                     # [1, 1]

        # weighted sum over P as an MXU NT-matmul: [1,P] x [C,P]^T -> [1,C]
        wsum = jax.lax.dot_general(
            e, x,
            dimension_numbers=(((1,), (1,)), ((), ())),
            preferred_element_type=jnp.float32,
        )                                                              # [1, C]

        # Fold the softmax normalization into the tiny [1, C] result.
        # (approx=False: exact divide; it is one scalar per batch element.)
        row = wsum * pl.reciprocal(denom, approx=False)
        out_ref[tb, :] = row[0, :].astype(out_ref.dtype)


def _pick_tb(batch, channels, positions, budget_bytes=8 * 1024 * 1024):
    """Largest divisor of `batch` whose double-buffered x block fits the budget."""
    per_elem_bytes = channels * positions * 4
    best = 1
    for tb in range(1, batch + 1):
        if batch % tb == 0 and 2 * tb * per_elem_bytes <= budget_bytes:
            best = tb
    return best


@jax.jit
def global_attention_pooling_2d(x_nchw, w1, b1, w2, b2):
    """x_nchw: [B,C,H,W] f32; w1: [C,A]; b1: [A]; w2: [A,1]; b2: [1] -> [B,C] f32.

    b2 is accepted for API parity but unused: softmax is shift-invariant.
    """
    del b2
    B, C, H, W = x_nchw.shape
    P = H * W
    A = w1.shape[1]

    # Free reshape: NCHW -> [B, C, P]. No transpose / extra HBM pass.
    x_bcp = x_nchw.reshape(B, C, P).astype(jnp.float32)
    w1t = jnp.transpose(w1).astype(jnp.float32)      # [A, C]  (tiny, weight-side)
    b1_col = b1.reshape(A, 1).astype(jnp.float32)    # [A, 1]
    w2t = jnp.transpose(w2).astype(jnp.float32)      # [1, A]

    TB = _pick_tb(B, C, P)
    grid = (B // TB,)

    # TODO(synk): for very large C*P (v7x 64 MiB VMEM) add an inner grid axis
    # over P with an online-softmax accumulator instead of shrinking TB.

    grid_spec = pltpu.PrefetchScalarGridSpec(
        num_scalar_prefetch=0,
        grid=grid,
        in_specs=[
            pl.BlockSpec((TB, C, P), lambda i: (i, 0, 0)),
            pl.BlockSpec((A, C), lambda i: (0, 0)),
            pl.BlockSpec((A, 1), lambda i: (0, 0)),
            pl.BlockSpec((1, A), lambda i: (0, 0)),
        ],
        out_specs=pl.BlockSpec((TB, C), lambda i: (i, 0)),
    )

    return pl.pallas_call(
        _gap_kernel,
        out_shape=jax.ShapeDtypeStruct((B, C), jnp.float32),
        grid_spec=grid_spec,
        compiler_params=pltpu.CompilerParams(
            dimension_semantics=("parallel",),
        ),
    )(x_bcp, w1t, b1_col, w2t)


def _reference(x_nchw, w1, b1, w2, b2):
    """Pure-JAX reference matching the PyTorch module."""
    B, C, H, W = x_nchw.shape
    P = H * W
    hi = jax.lax.Precision.HIGHEST
    x = jnp.transpose(x_nchw.reshape(B, C, P), (0, 2, 1))                # [B,P,C]
    h = jnp.tanh(jnp.einsum("bpc,ca->bpa", x, w1, precision=hi) + b1)    # [B,P,A]
    s = jnp.einsum("bpa,ao->bpo", h, w2, precision=hi)[..., 0] + b2      # [B,P]
    attn = jax.nn.softmax(s, axis=-1)                                    # [B,P]
    return jnp.einsum("bp,bpc->bc", attn, x, precision=hi)               # [B,C]


if __name__ == "__main__":
    # small shapes consistent with the module
    B, C, H, W = 2, 4, 16, 16     # input_dim = C
    A = 8                         # attention_dim

    key = jax.random.PRNGKey(0)
    kx, k1, k2, k3, k4 = jax.random.split(key, 5)

    x = jax.random.normal(kx, (B, C, H, W), dtype=jnp.float32)

    # Conv2d(C, A, 1): weight [A, C, 1, 1] -> stored here as [C, A]; bias [A]
    w1 = 0.1 * jax.random.normal(k1, (C, A), dtype=jnp.float32)
    b1 = 0.1 * jax.random.normal(k2, (A,), dtype=jnp.float32)
    # Conv2d(A, 1, 1): weight [1, A, 1, 1] -> stored here as [A, 1]; bias [1]
    w2 = 0.1 * jax.random.normal(k3, (A, 1), dtype=jnp.float32)
    b2 = 0.1 * jax.random.normal(k4, (1,), dtype=jnp.float32)

    out = global_attention_pooling_2d(x, w1, b1, w2, b2)
    out = jax.block_until_ready(out)

    ref = _reference(x, w1, b1, w2, b2[0])
    np.testing.assert_allclose(np.asarray(out), np.asarray(ref), rtol=1e-4, atol=1e-4)

    print("KERNEL_OK")
</pallas_src>

<mosaic_0001>
module attributes {stable_mosaic.version = 11 : i64} {
  func.func @_gap_kernel(%arg0: i32, %arg1: memref<2x4x256xf32, #tpu.memory_space<vmem>>, %arg2: memref<8x4xf32, #tpu.memory_space<vmem>>, %arg3: memref<8x1xf32, #tpu.memory_space<vmem>>, %arg4: memref<1x8xf32, #tpu.memory_space<vmem>>, %arg5: memref<2x4xf32, #tpu.memory_space<vmem>>) attributes {dimension_semantics = [#tpu.dimension_semantics<parallel>], iteration_bounds = array<i64: 1>, scalar_prefetch = 0 : i64, scratch_operands = 0 : i64, tpu.core_type = #tpu.core_type<tc>, window_params = [{transform_indices = @transform_0, window_bounds = array<i64: 2, 4, 256>}, {pipeline_mode = #tpu.pipeline_mode<synchronous>, transform_indices = @transform_1, window_bounds = array<i64: 8, 4>}, {pipeline_mode = #tpu.pipeline_mode<synchronous>, transform_indices = @transform_2, window_bounds = array<i64: 8, 1>}, {pipeline_mode = #tpu.pipeline_mode<synchronous>, transform_indices = @transform_3, window_bounds = array<i64: 1, 8>}, {transform_indices = @transform_4, window_bounds = array<i64: 2, 4>}]} {
    %c0 = arith.constant 0 : index
    %c0_0 = arith.constant 0 : index
    %0 = vector.load %arg2[%c0, %c0_0] : memref<8x4xf32, #tpu.memory_space<vmem>>, vector<8x4xf32>
    %c0_1 = arith.constant 0 : index
    %c0_2 = arith.constant 0 : index
    %1 = vector.load %arg3[%c0_1, %c0_2] : memref<8x1xf32, #tpu.memory_space<vmem>>, vector<8x1xf32>
    %c0_3 = arith.constant 0 : index
    %c0_4 = arith.constant 0 : index
    %2 = vector.load %arg4[%c0_3, %c0_4] : memref<1x8xf32, #tpu.memory_space<vmem>>, vector<1x8xf32>
    %c0_5 = arith.constant 0 : index
    %c0_6 = arith.constant 0 : index
    %c0_7 = arith.constant 0 : index
    %3 = vector.load %arg1[%c0_5, %c0_6, %c0_7] : memref<2x4x256xf32, #tpu.memory_space<vmem>>, vector<1x4x256xf32>
    %4 = vector.shape_cast %3 : vector<1x4x256xf32> to vector<4x256xf32>
    %cst = arith.constant dense<0.000000e+00> : vector<8x256xf32>
    %5 = tpu.matmul %0, %4, %cst {dimension_numbers = #tpu.dot_dimension_numbers<[1], [0], [0], [1], [0, 0, 1, 1], [], []>} : vector<8x4xf32>, vector<4x256xf32>, vector<8x256xf32> -> vector<8x256xf32>
    %6 = vector.broadcast %1 : vector<8x1xf32> to vector<8x256xf32>
    %7 = arith.addf %5, %6 : vector<8x256xf32>
    %8 = math.tanh %7 : vector<8x256xf32>
    %cst_8 = arith.constant dense<0.000000e+00> : vector<1x256xf32>
    %9 = tpu.matmul %2, %8, %cst_8 {dimension_numbers = #tpu.dot_dimension_numbers<[1], [0], [0], [1], [0, 0, 1, 1], [], []>} : vector<1x8xf32>, vector<8x256xf32>, vector<1x256xf32> -> vector<1x256xf32>
    %cst_9 = arith.constant dense<0xFF800000> : vector<1xf32>
    %10 = vector.multi_reduction <maximumf>, %9, %cst_9 [1] : vector<1x256xf32> to vector<1xf32>
    %11 = vector.shape_cast %10 : vector<1xf32> to vector<1x1xf32>
    %12 = vector.broadcast %11 : vector<1x1xf32> to vector<1x256xf32>
    %13 = arith.subf %9, %12 : vector<1x256xf32>
    %14 = math.exp %13 : vector<1x256xf32>
    %cst_10 = arith.constant dense<0.000000e+00> : vector<1xf32>
    %15 = vector.multi_reduction <add>, %14, %cst_10 [1] : vector<1x256xf32> to vector<1xf32>
    %16 = vector.shape_cast %15 : vector<1xf32> to vector<1x1xf32>
    %cst_11 = arith.constant dense<0.000000e+00> : vector<1x4xf32>
    %17 = tpu.matmul %14, %4, %cst_11 {dimension_numbers = #tpu.dot_dimension_numbers<[1], [1], [0], [0], [0, 0, 1, 0], [], []>} : vector<1x256xf32>, vector<4x256xf32>, vector<1x4xf32> -> vector<1x4xf32>
    %18 = tpu.reciprocal %16 : vector<1x1xf32> -> vector<1x1xf32>
    %19 = vector.broadcast %18 : vector<1x1xf32> to vector<1x4xf32>
    %20 = arith.mulf %17, %19 : vector<1x4xf32>
    %21 = vector.shape_cast %20 : vector<1x4xf32> to vector<4xf32>
    %c0_12 = arith.constant 0 : index
    %c0_13 = arith.constant 0 : index
    %22 = vector.load %arg5[%c0_12, %c0_13] : memref<2x4xf32, #tpu.memory_space<vmem>>, vector<1x4xf32>
    %23 = vector.shape_cast %22 : vector<1x4xf32> to vector<4xf32>
    %24 = vector.shape_cast %21 : vector<4xf32> to vector<1x4xf32>
    tpu.vector_store %arg5[%c0_12, %c0_13], %24 {strides = array<i32>} : memref<2x4xf32, #tpu.memory_space<vmem>>, vector<1x4xf32>,
    %c1 = arith.constant 1 : index
    %c0_14 = arith.constant 0 : index
    %c0_15 = arith.constant 0 : index
    %25 = vector.load %arg1[%c1, %c0_14, %c0_15] : memref<2x4x256xf32, #tpu.memory_space<vmem>>, vector<1x4x256xf32>
    %26 = vector.shape_cast %25 : vector<1x4x256xf32> to vector<4x256xf32>
    %cst_16 = arith.constant dense<0.000000e+00> : vector<8x256xf32>
    %27 = tpu.matmul %0, %26, %cst_16 {dimension_numbers = #tpu.dot_dimension_numbers<[1], [0], [0], [1], [0, 0, 1, 1], [], []>} : vector<8x4xf32>, vector<4x256xf32>, vector<8x256xf32> -> vector<8x256xf32>
    %28 = vector.broadcast %1 : vector<8x1xf32> to vector<8x256xf32>
    %29 = arith.addf %27, %28 : vector<8x256xf32>
    %30 = math.tanh %29 : vector<8x256xf32>
    %cst_17 = arith.constant dense<0.000000e+00> : vector<1x256xf32>
    %31 = tpu.matmul %2, %30, %cst_17 {dimension_numbers = #tpu.dot_dimension_numbers<[1], [0], [0], [1], [0, 0, 1, 1], [], []>} : vector<1x8xf32>, vector<8x256xf32>, vector<1x256xf32> -> vector<1x256xf32>
    %cst_18 = arith.constant dense<0xFF800000> : vector<1xf32>
    %32 = vector.multi_reduction <maximumf>, %31, %cst_18 [1] : vector<1x256xf32> to vector<1xf32>
    %33 = vector.shape_cast %32 : vector<1xf32> to vector<1x1xf32>
    %34 = vector.broadcast %33 : vector<1x1xf32> to vector<1x256xf32>
    %35 = arith.subf %31, %34 : vector<1x256xf32>
    %36 = math.exp %35 : vector<1x256xf32>
    %cst_19 = arith.constant dense<0.000000e+00> : vector<1xf32>
    %37 = vector.multi_reduction <add>, %36, %cst_19 [1] : vector<1x256xf32> to vector<1xf32>
    %38 = vector.shape_cast %37 : vector<1xf32> to vector<1x1xf32>
    %cst_20 = arith.constant dense<0.000000e+00> : vector<1x4xf32>
    %39 = tpu.matmul %36, %26, %cst_20 {dimension_numbers = #tpu.dot_dimension_numbers<[1], [1], [0], [0], [0, 0, 1, 0], [], []>} : vector<1x256xf32>, vector<4x256xf32>, vector<1x4xf32> -> vector<1x4xf32>
    %40 = tpu.reciprocal %38 : vector<1x1xf32> -> vector<1x1xf32>
    %41 = vector.broadcast %40 : vector<1x1xf32> to vector<1x4xf32>
    %42 = arith.mulf %39, %41 : vector<1x4xf32>
    %43 = vector.shape_cast %42 : vector<1x4xf32> to vector<4xf32>
    %c1_21 = arith.constant 1 : index
    %c0_22 = arith.constant 0 : index
    %44 = vector.load %arg5[%c1_21, %c0_22] : memref<2x4xf32, #tpu.memory_space<vmem>>, vector<1x4xf32>
    %45 = vector.shape_cast %44 : vector<1x4xf32> to vector<4xf32>
    %46 = vector.shape_cast %43 : vector<4xf32> to vector<1x4xf32>
    tpu.vector_store %arg5[%c1_21, %c0_22], %46 {strides = array<i32>} : memref<2x4xf32, #tpu.memory_space<vmem>>, vector<1x4xf32>,
    return
  }
  func.func @transform_0(%arg0: i32) -> (i32, i32, i32) {
    %c0_i32 = arith.constant 0 : i32
    %c0_i32_0 = arith.constant 0 : i32
    %c0_i32_1 = arith.constant 0 : i32
    return %arg0, %c0_i32, %c0_i32_0 : i32, i32, i32
  }
  func.func @transform_1(%arg0: i32) -> (i32, i32) {
    %c0_i32 = arith.constant 0 : i32
    %c0_i32_0 = arith.constant 0 : i32
    %c0_i32_1 = arith.constant 0 : i32
    return %c0_i32, %c0_i32_0 : i32, i32
  }
  func.func @transform_2(%arg0: i32) -> (i32, i32) {
    %c0_i32 = arith.constant 0 : i32
    %c0_i32_0 = arith.constant 0 : i32
    %c0_i32_1 = arith.constant 0 : i32
    return %c0_i32, %c0_i32_0 : i32, i32
  }
  func.func @transform_3(%arg0: i32) -> (i32, i32) {
    %c0_i32 = arith.constant 0 : i32
    %c0_i32_0 = arith.constant 0 : i32
    %c0_i32_1 = arith.constant 0 : i32
    return %c0_i32, %c0_i32_0 : i32, i32
  }
  func.func @transform_4(%arg0: i32) -> (i32, i32) {
    %c0_i32 = arith.constant 0 : i32
    %c0_i32_0 = arith.constant 0 : i32
    return %arg0, %c0_i32 : i32, i32
  }
}

</mosaic_0001>

<bundles_post_ra>
// kernel: global_attention_pooling_2d.1
= control target key start
LH: loop header
LB: loop body
LE: loop exit
PB: predicated region body
PF: predicated region fallthrough
CT: control target
= control target key end

     0   :  { %v452_v1 = vmov 0   ;;  %s519_s0 = inlined_call_operand.vmem [shape: f32[2,4,256], index: 0, kind: input, shape index: {}]   ;;  %s520_s1 = inlined_call_operand.vmem [shape: f32[8,4], index: 1, kind: input, shape index: {}]   ;;  %s521_s2 = inlined_call_operand.vmem [shape: f32[8,1], index: 2, kind: input, shape index: {}]   ;;  %s522_s3 = inlined_call_operand.vmem [shape: f32[1,8], index: 3, kind: input, shape index: {}]   ;;  %s523_s4 = inlined_call_operand.hbm [shape: f32[2,4], index: 4, kind: output, shape index: {}]  }
   0x1   :  { %v21_v0 = vld [vmem:[%s519_s0] sm:$0xff]  ;;  %405 = vset.pattern.permute.xlu0 %v452_v1 }
   0x2   :  { %28 = vst [vmem:[#allocation1] ss:$2 sm:$0xff] %v21_v0  ;;  %v19_v2 = vld [vmem:[%s521_s2] sm:$0xff] }
   0x3   :  { %9 = vsyncpa [#allocation3], 0  ;;  %24 = vperm.xlu0 %405, %v19_v2   ;;  %vm35_vm0 = vcmask 1043456   ;;  %v18_v3 = vld [vmem:[%s520_s1] sm:$0xff]  ;;  %vm31_vm1 = vcmask 31744   ;;  %v396_v6 = vld [vmem:[%s519_s0 + $0x8] sm:$0xff] }
   0x4   :  { %v20_v16 = vld [vmem:[%s522_s3] sm:$0x1]  ;;  %vm82_vm2 = vcmask 64512   ;;  %vm126_vm3 = vcmask 1040384   ;;  %vm203_vm8 = vcmask 24576   ;;  %s453_s0 = smov [#allocation2]  }
   0x5   :  { %s379_s3 = sshll.u32 %s453_s0, 4  ;;  %s381_s25 = sshll.u32 %s523_s4, 4  ;;  %s380_s3 = int_to_ptr.vmem [resolvable:$true] %s379_s3  ;;  %s382_s25 = int_to_ptr.hbm [resolvable:$true] %s381_s25 }
   0x9   :  { %v29_v4 = vld.sshfl [vmem:[#allocation1] sm:$0xff pattern:$0x75316420]  ;;  %v30_v5 = vld.sshfl [vmem:[#allocation1 + $0x8] sm:$0xff pattern:$0x75316420] }
   0xa   :  { %390 = vmatpush.msk.msra.mxu0 %vm35_vm0, %v29_v4  ;;  %392 = vmatpush.msk.msra.mxu1 %vm35_vm0, %v30_v5  ;;  %143 = vst [vmem:[#allocation1] ss:$2 sm:$0xff] %v21_v0 }
   0xb   :  { %391 = vmatmul.msk.f32.vlgmr.msra.gmra.mxu0 %vm31_vm1, %v18_v3  ;;  %393 = vmatmul.msk.f32.vlgmr.msra.gmra.mxu1 %vm31_vm1, %v18_v3 }
  0x11   :  { %v144_v7 = vld.sshfl [vmem:[#allocation1] sm:$0xff pattern:$0x75316420]  ;;  %v145_v8 = vld.sshfl [vmem:[#allocation1 + $0x8] sm:$0xff pattern:$0x75316420] }
  0x12   :  { %208 = vst [vmem:[#allocation1] ss:$2 sm:$0xff] %v396_v6  ;;  %163 = vmatpush.xpose.msrb.mxu0 %v144_v7  ;;  %183 = vmatpush.xpose.msrb.mxu1 %v145_v8 }
  0x19   :  { %v209_v9 = vld.sshfl [vmem:[#allocation1] sm:$0xff pattern:$0x75316420]  ;;  %v210_v10 = vld.sshfl [vmem:[#allocation1 + $0x8] sm:$0xff pattern:$0x75316420] }
  0x1a   :  { %313 = vst [vmem:[#allocation1] ss:$2 sm:$0xff] %v396_v6 }
  0x21   :  { %v314_v48 = vld.sshfl [vmem:[#allocation1] sm:$0xff pattern:$0x75316420]  ;;  %v315_v49 = vld.sshfl [vmem:[#allocation1 + $0x8] sm:$0xff pattern:$0x75316420] }
  0x75   :  { %v25_v11 = vpop.permute.xlu0 %24 }
  0x88   :  { %v57_v12 = vpop.f32.mrf.mxu0  ;;  %v77_v13 = vpop.f32.mrf.mxu1 }
  0x89   :  { %v58_v14 = vadd.f32 %v57_v12, %v25_v11  ;;  %v78_v15 = vadd.f32 %v77_v13, %v25_v11 }
  0x8b   :  { %406 = vtanh.f32 %v58_v14 }
  0x8c   :  { %408 = vtanh.f32 %v78_v15 }
  0x91   :  { %v407_v17 = vpop.eup %406 }
  0x92   :  { %v409_v18 = vpop.eup %408  ;;  %101 = vmatpush.msra.mxu2 %v407_v17 }
  0x93   :  { %121 = vmatpush.msra.mxu3 %v409_v18  ;;  %394 = vmatmul.msk.f32.vlgmr.msra.gmra.mxu2 %vm82_vm2, %v20_v16 }
  0x94   :  { %395 = vmatmul.msk.f32.vlgmr.msra.gmra.mxu3 %vm82_vm2, %v20_v16  ;;  %397 = vmatpush.msk.msrb.mxu2 %vm35_vm0, %v209_v9 }
  0x95   :  { %399 = vmatpush.msk.msrb.mxu3 %vm35_vm0, %v210_v10 }
  0x96   :  { %333 = vmatpush.xpose.msra.mxu2 %v314_v48 }
  0x97   :  { %353 = vmatpush.xpose.msra.mxu3 %v315_v49 }
  0x9b   :  { %398 = vmatmul.msk.f32.vlgmr.msrb.gmra.mxu2 %vm31_vm1, %v18_v3 }
  0x9c   :  { %400 = vmatmul.msk.f32.vlgmr.msrb.gmra.mxu3 %vm31_vm1, %v18_v3 }
 0x116   :  { %v103_v19 = vpop.f32.mrf.mxu2 }
 0x117   :  { %v127_v20 = vsel %vm126_vm3, %v103_v19, -inf  ;;  %v123_v21 = vpop.f32.mrf.mxu3 }
 0x118   :  { %v128_v22 = vsel %vm126_vm3, %v123_v21, -inf }
 0x119   :  { %v129_v23 = vmax.f32 %v127_v20, %v128_v22 }
 0x11b   :  { %130 = vmax.xlane.f32.xlu0 %v129_v23 }
 0x11e   :  { %v232_v24 = vpop.f32.mrf.mxu2 }
 0x11f   :  { %v233_v25 = vadd.f32 %v232_v24, %v25_v11  ;;  %v252_v26 = vpop.f32.mrf.mxu3 }
 0x120   :  { %v253_v27 = vadd.f32 %v252_v26, %v25_v11 }
 0x121   :  { %410 = vtanh.f32 %v233_v25 }
 0x122   :  { %412 = vtanh.f32 %v253_v27 }
 0x127   :  { %v411_v28 = vpop.eup %410 }
 0x128   :  { %v413_v29 = vpop.eup %412  ;;  %272 = vmatpush.msra.mxu0 %v411_v28 }
 0x129   :  { %292 = vmatpush.msra.mxu1 %v413_v29 }
 0x18e   :  { %v131_v30 = vpop.xlane.xlu0 %130 }
 0x18f   :  { %v132_v31 = vsub.f32 %v103_v19, %v131_v30  ;;  %v133_v32 = vsub.f32 %v123_v21, %v131_v30 }
 0x191   :  { %v134_v33 = vmul.f32 1.442695, %v132_v31  ;;  %v136_v34 = vmul.f32 1.442695, %v133_v32 }
 0x193   :  { %414 = vpow2.f32 %v134_v33 }
 0x194   :  { %416 = vpow2.f32 %v136_v34 }
 0x199   :  { %v415_v35 = vpop.eup %414 }
 0x19a   :  { %v417_v36 = vpop.eup %416  ;;  %164 = vmatmul.f32.vlgmr.msrb.gmra.mxu0 %v415_v35  ;;  %v138_v37 = vsel %vm126_vm3, %v415_v35, 0.0 }
 0x19b   :  { %184 = vmatmul.f32.vlgmr.msrb.gmra.mxu1 %v417_v36  ;;  %v139_v38 = vsel %vm126_vm3, %v417_v36, 0.0 }
 0x19c   :  { %v140_v39 = vadd.f32 %v139_v38, %v138_v37 }
 0x1a2   :  { %401 = vmatmul.msk.f32.vlgmr.msra.gmra.mxu0 %vm82_vm2, %v20_v16 }
 0x1a3   :  { %402 = vmatmul.msk.f32.vlgmr.msra.gmra.mxu1 %vm82_vm2, %v20_v16 }
 0x217   :  { %v165_v40 = vpop.f32.mrf.mxu0 }
 0x218   :  { %v185_v41 = vpop.f32.mrf.mxu1 }
 0x219   :  { %v186_v42 = vadd.f32 %v185_v41, %v165_v40 }
 0x21f   :  { %v274_v43 = vpop.f32.mrf.mxu0 }
 0x220   :  { %v297_v44 = vsel %vm126_vm3, %v274_v43, -inf  ;;  %v294_v45 = vpop.f32.mrf.mxu1 }
 0x221   :  { %v298_v46 = vsel %vm126_vm3, %v294_v45, -inf }
 0x222   :  { %v299_v47 = vmax.f32 %v297_v44, %v298_v46 }
 0x224   :  { %300 = vmax.xlane.f32.xlu1 %v299_v47 }
 0x22c   :  { %141 = vadd.xlane.f32.xlu1 %v140_v39 }
 0x297   :  { %v301_v50 = vpop.xlane.xlu1 %300 }
 0x298   :  { %v302_v51 = vsub.f32 %v274_v43, %v301_v50  ;;  %v303_v52 = vsub.f32 %v294_v45, %v301_v50 }
 0x29a   :  { %v304_v53 = vmul.f32 1.442695, %v302_v51  ;;  %v306_v54 = vmul.f32 1.442695, %v303_v52 }
 0x29c   :  { %418 = vpow2.f32 %v304_v53 }
 0x29d   :  { %420 = vpow2.f32 %v306_v54 }
 0x29f   :  { %v142_v55 = vpop.xlane.xlu1 %141 }
 0x2a0   :  { %422 = vrcp.f32 %v142_v55  ;;  %v199_v0 = vand.u32 2147483648, %v142_v55  ;;  %v197_v2 = vand.u32 2147483647, %v142_v55  ;;  %vm193_vm5 = vweird.f32 %v142_v55 }
 0x2a2   :  { %v419_v56 = vpop.eup %418  ;;  %v200_v4 = vor.u32 1.1754944e-38, %v199_v0  ;;  %vm198_vm7 = vcmp.eq.f32.partialorder %v197_v2, 8.507059e+37 }
 0x2a3   :  { %v421_v57 = vpop.eup %420  ;;  %334 = vmatmul.f32.vlgmr.msra.gmra.mxu2 %v419_v56  ;;  %v308_v58 = vsel %vm126_vm3, %v419_v56, 0.0 }
 0x2a4   :  { %354 = vmatmul.f32.vlgmr.msra.gmra.mxu3 %v421_v57  ;;  %v309_v59 = vsel %vm126_vm3, %v421_v57, 0.0 }
 0x2a5   :  { %v310_v60 = vadd.f32 %v309_v59, %v308_v58 }
 0x2a6   :  { %v423_v61 = vpop.eup %422 }
 0x2a7   :  { %v189_v62 = vmul.f32 %v423_v61, %v142_v55  ;;  %311 = vadd.xlane.f32.xlu2 %v310_v60  ;;  %vm194_vm4 = vweird.f32 %v423_v61 }
 0x2a8   :  { %vm195_vm6 = vmor %vm193_vm5, %vm194_vm4 }
 0x2a9   :  { %v190_v63 = vsub.f32 1.0, %v189_v62 }
 0x2ab   :  { %v191_v1 = vmul.f32 %v423_v61, %v190_v63 }
 0x2ad   :  { %v192_v3 = vadd.f32 %v423_v61, %v191_v1 }
 0x2af   :  { %v196_v5 = vsel %vm195_vm6, %v423_v61, %v192_v3 }
 0x2b0   :  { %v201_v6 = vsel %vm198_vm7, %v200_v4, %v196_v5 }
 0x2b1   :  { %v202_v7 = vmul.f32 %v201_v6, %v186_v42 }
 0x2b3   :  { %204 = vst.msk [vmem:[#allocation2] sm:$0x1] %vm203_vm8, %v202_v7 }
 0x31a   :  { %v312_v8 = vpop.xlane.xlu2 %311 }
 0x31b   :  { %424 = vrcp.f32 %v312_v8  ;;  %v369_v12 = vand.u32 2147483648, %v312_v8  ;;  %v367_v14 = vand.u32 2147483647, %v312_v8  ;;  %vm363_vm10 = vweird.f32 %v312_v8 }
 0x31d   :  { %v370_v18 = vor.u32 1.1754944e-38, %v369_v12  ;;  %vm368_vm12 = vcmp.eq.f32.partialorder %v367_v14, 8.507059e+37 }
 0x321   :  { %v425_v9 = vpop.eup %424 }
 0x322   :  { %v359_v10 = vmul.f32 %v425_v9, %v312_v8  ;;  %vm364_vm9 = vweird.f32 %v425_v9 }
 0x323   :  { %vm365_vm11 = vmor %vm363_vm10, %vm364_vm9 }
 0x324   :  { %v360_v11 = vsub.f32 1.0, %v359_v10 }
 0x326   :  { %v361_v13 = vmul.f32 %v425_v9, %v360_v11  ;;  %v335_v15 = vpop.f32.mrf.mxu2 }
 0x327   :  { %v355_v16 = vpop.f32.mrf.mxu3 }
 0x328   :  { %v362_v17 = vadd.f32 %v425_v9, %v361_v13  ;;  %v356_v19 = vadd.f32 %v355_v16, %v335_v15 }
 0x32a   :  { %v366_v20 = vsel %vm365_vm11, %v425_v9, %v362_v17 }
 0x32b   :  { %v371_v21 = vsel %vm368_vm12, %v370_v18, %v366_v20 }
 0x32c   :  { %v372_v22 = vmul.f32 %v371_v21, %v356_v19 }
 0x32e   :  { %373 = vst.msk [vmem:[#allocation2 + $0x1] sm:$0x1] %vm203_vm8, %v372_v22 }
 0x32f   :  { %384 = dma.vmem_to_hbm [thread:$0]  %s380_s3, 32, %s382_s25, [#allocation3]  }
 0x330   :  { %450 = dma.done.wait [#allocation3], 32  }
 0x331   :  { %451 = vsyncadd [#allocation3], 4294967264 }
 0x332   :  { %389 = vsyncpa [#allocation3], 1 }

</bundles_post_ra>
